<compile_context>
chip_gen: v7x
topology: tpu7x:2x2x1
jax: 0.10.0
libtpu: 0.0.40
codegen_flags: <defaults>
</compile_context>

<pallas_src>
import functools

import jax
import jax.numpy as jnp
from jax.experimental import pallas as pl
from jax.experimental.pallas import tpu as pltpu


def _round_up(x, m):
    return (x + m - 1) // m * m


# ----------------------------------------------------------------------------
# Fused kernel: whole MLP in one body, one packed MXU matmul per layer.
# ----------------------------------------------------------------------------
def _fused_mlp_kernel(*refs, n_layers, relu_layer_idx):
    """refs = (x_ref, w0, b0, w1, b1, ..., w_{L-1}, b_{L-1}, out_ref).

    x_ref:  [TB, round_up(2*K0,128)]   packed/padded activations [xr|xi|0]
    w_l:    [round_up(2K,128), round_up(2N,128)]   packed/padded weight
    b_l:    [1, round_up(2N,128)]                   packed/padded bias
    out:    [TB, round_up(2*Nout,128)]
    """
    x_ref = refs[0]
    out_ref = refs[-1]
    wb_refs = refs[1:-1]

    h = x_ref[...]
    for l in range(n_layers):
        w = wb_refs[2 * l][...]
        b = wb_refs[2 * l + 1][...]
        # One MXU matmul per complex layer (real+imag packed on the lane axis).
        h = jnp.dot(h, w, preferred_element_type=jnp.float32) + b
        if l == relu_layer_idx:
            # CartReLU: ReLU on real and imaginary parts independently.
            h = jnp.maximum(h, 0.0)
    out_ref[...] = h.astype(out_ref.dtype)


# ----------------------------------------------------------------------------
# Parameter handling
# ----------------------------------------------------------------------------
def init_params(key, input_size, hidden_sizes, output_size, complex_init=False):
    """Per-layer (wr, wi, br, bi); wr/wi stored pre-transposed as [in, out].

    complex_init=False mirrors the PyTorch module: nn.Linear uniform init then
    `.to(torch.complex64)` => imaginary parts are zero.
    complex_init=True draws nonzero imaginary parts too (exercises all four
    cross terms of the complex matmul).
    """
    dims = [input_size] + list(hidden_sizes) + [output_size]
    params = []
    for i in range(len(dims) - 1):
        k_in, k_out = dims[i], dims[i + 1]
        key, kwr, kbr, kwi, kbi = jax.random.split(key, 5)
        bound = 1.0 / jnp.sqrt(jnp.float32(k_in))
        wr = jax.random.uniform(kwr, (k_in, k_out), jnp.float32, -bound, bound)
        br = jax.random.uniform(kbr, (1, k_out), jnp.float32, -bound, bound)
        if complex_init:
            wi = jax.random.uniform(kwi, (k_in, k_out), jnp.float32, -bound, bound)
            bi = jax.random.uniform(kbi, (1, k_out), jnp.float32, -bound, bound)
        else:
            wi = jnp.zeros((k_in, k_out), jnp.float32)
            bi = jnp.zeros((1, k_out), jnp.float32)
        params.append((wr, wi, br, bi))
    return params


def pack_params(params, pad_to=128):
    """Pack each layer's (wr, wi, br, bi) into lane-padded (W2, b2).

    W2 = dense [[wr, wi], [-wi, wr]] (2K, 2N) placed in the top-left of a
    zero matrix of shape (round_up(2K,128), round_up(2N,128)); b2 = [br | bi]
    padded at the tail.  Padding lanes stay exactly zero through the network,
    and each layer's [yr|yi|0] output layout lines up with the next layer's
    W2 row layout by construction.
    """
    packed = []
    for wr, wi, br, bi in params:
        K, N = wr.shape
        Kp2 = _round_up(2 * K, pad_to)
        Np2 = _round_up(2 * N, pad_to)
        w_dense = jnp.block([[wr, wi], [-wi, wr]]).astype(jnp.float32)   # (2K, 2N)
        W2 = jnp.zeros((Kp2, Np2), jnp.float32).at[: 2 * K, : 2 * N].set(w_dense)
        b_dense = jnp.concatenate(
            [jnp.reshape(br, (-1,)), jnp.reshape(bi, (-1,))]).astype(jnp.float32)
        b2 = jnp.zeros((1, Np2), jnp.float32).at[0, : 2 * N].set(b_dense)
        packed.append((W2, b2))
    return packed


# ----------------------------------------------------------------------------
# Forward pass (matches MLP_1_activ.forward, minus the file logging)
# ----------------------------------------------------------------------------
def mlp_1_activ_forward(x_complex, packed_params, output_size):
    """x_complex: complex64, any shape with leading batch dim.
    Returns complex64 of shape [B, output_size, 1] (the trailing unsqueeze)."""
    B = x_complex.shape[0]
    x_flat = x_complex.reshape(B, -1)                 # x.view(x.size(0), -1)
    xr = jnp.real(x_flat).astype(jnp.float32)
    xi = jnp.imag(x_flat).astype(jnp.float32)
    K0 = xr.shape[1]

    n_layers = len(packed_params)
    two_k0p = packed_params[0][0].shape[0]            # round_up(2*K0, 128)
    nout2p = packed_params[-1][0].shape[1]            # round_up(2*Nout, 128)

    # Batch tile: multiple of 8 sublanes (f32), up to 512 rows; keep >= 2 grid
    # steps for large batches so both v7x TensorCores get work.
    TB = min(512, _round_up(B, 8))
    if B > 128 and _round_up(B, TB) // TB < 2:
        TB = _round_up(pl.cdiv(B, 2), 8)
    Bp = _round_up(B, TB)

    # Packed, tail-padded activations built with one concatenate + one pad.
    x2 = jnp.concatenate([xr, xi], axis=1)                       # (B, 2*K0)
    x2 = jnp.pad(x2, ((0, Bp - B), (0, two_k0p - 2 * K0)))       # (Bp, 2*K0p)

    kernel = functools.partial(_fused_mlp_kernel,
                               n_layers=n_layers,
                               relu_layer_idx=n_layers - 2)

    in_specs = [pl.BlockSpec((TB, two_k0p), lambda i: (i, 0))]
    flat_inputs = [x2]
    flops = 0
    bytes_accessed = x2.size * 4 + Bp * nout2p * 4
    for W2, b2 in packed_params:
        # Grid-invariant operands: single-buffered (no benefit from double
        # buffering, halves their VMEM footprint).
        in_specs.append(pl.BlockSpec(W2.shape, lambda i: (0, 0),
                                     pipeline_mode=pl.Buffered(1)))
        in_specs.append(pl.BlockSpec(b2.shape, lambda i: (0, 0),
                                     pipeline_mode=pl.Buffered(1)))
        flat_inputs += [W2, b2]
        flops += 2 * Bp * W2.shape[0] * W2.shape[1]
        bytes_accessed += (W2.size + b2.size) * 4

    # VMEM budget: all weights resident (single-buffered) + double-buffered
    # activation in/out + headroom for intermediates.  Capped at v7x physical.
    weight_bytes = sum((W2.size + b2.size) * 4 for W2, b2 in packed_params)
    max_width = max(W2.shape[1] for W2, _ in packed_params)
    act_bytes = 2 * TB * two_k0p * 4 + 2 * TB * nout2p * 4 + 4 * TB * max_width * 4
    vmem_limit = int(min(64 << 20, max(16 << 20, 2 * (weight_bytes + act_bytes))))

    y2 = pl.pallas_call(
        kernel,
        out_shape=jax.ShapeDtypeStruct((Bp, nout2p), jnp.float32),
        grid=(Bp // TB,),
        in_specs=in_specs,
        out_specs=pl.BlockSpec((TB, nout2p), lambda i: (i, 0)),
        compiler_params=pltpu.CompilerParams(
            dimension_semantics=("parallel",),
            vmem_limit_bytes=vmem_limit),
        cost_estimate=pl.CostEstimate(flops=flops, transcendentals=0,
                                      bytes_accessed=bytes_accessed),
    )(*flat_inputs)

    # Packed output layout is [yr(0:N) | yi(N:2N) | pad]; N is the true
    # last-layer output size (not the padded half-width).
    yr = y2[:B, :output_size]
    yi = y2[:B, output_size:2 * output_size]
    out = (yr + 1j * yi).astype(jnp.complex64)
    return out[..., None]                             # x.unsqueeze(-1)


# ----------------------------------------------------------------------------
# Pure-JAX complex reference for correctness checking
# ----------------------------------------------------------------------------
def _reference_forward(x_complex, params):
    B = x_complex.shape[0]
    x = x_complex.reshape(B, -1).astype(jnp.complex64)
    n_layers = len(params)
    for idx, (wr, wi, br, bi) in enumerate(params):
        w = (wr + 1j * wi).astype(jnp.complex64)
        b = (jnp.reshape(br, (1, -1)) + 1j * jnp.reshape(bi, (1, -1))
             ).astype(jnp.complex64)
        x = x @ w + b
        if idx == n_layers - 2:
            x = jnp.maximum(jnp.real(x), 0.0) + 1j * jnp.maximum(jnp.imag(x), 0.0)
    return x[..., None]


if __name__ == "__main__":
    # Small shapes consistent with the module (constructor args are free).
    batch = 4
    input_size = 32
    hidden_sizes = [64, 64, 64]
    output_size = 10

    key = jax.random.PRNGKey(0)
    k_params, k_params_c, k_xr, k_xi = jax.random.split(key, 4)

    xr = jax.random.normal(k_xr, (batch, input_size), jnp.float32)
    xi = jax.random.normal(k_xi, (batch, input_size), jnp.float32)
    x = (xr + 1j * xi).astype(jnp.complex64)

    # Case 1: mirrors the PyTorch init (.to(complex64) => zero imaginary parts).
    params = init_params(k_params, input_size, hidden_sizes, output_size)
    out = mlp_1_activ_forward(x, pack_params(params), output_size)
    out = jax.block_until_ready(out)
    ref = _reference_forward(x, params)
    assert out.shape == (batch, output_size, 1), out.shape
    assert out.dtype == jnp.complex64, out.dtype
    assert jnp.allclose(out, ref, atol=1e-4, rtol=1e-4), "mismatch (real-init)"

    # Case 2: random nonzero imaginary weights/biases -> exercises all four
    # cross terms of the complex matmul.
    params_c = init_params(k_params_c, input_size, hidden_sizes, output_size,
                           complex_init=True)
    out_c = jax.block_until_ready(
        mlp_1_activ_forward(x, pack_params(params_c), output_size))
    ref_c = _reference_forward(x, params_c)
    assert jnp.allclose(out_c, ref_c, atol=1e-4, rtol=1e-4), "mismatch (complex-init)"

    print("KERNEL_OK")
</pallas_src>

<mosaic_0001>
module attributes {stable_mosaic.version = 11 : i64} {
  func.func @_fused_mlp_kernel(%arg0: i32, %arg1: memref<8x128xf32, #tpu.memory_space<vmem>>, %arg2: memref<128x128xf32, #tpu.memory_space<vmem>>, %arg3: memref<1x128xf32, #tpu.memory_space<vmem>>, %arg4: memref<128x128xf32, #tpu.memory_space<vmem>>, %arg5: memref<1x128xf32, #tpu.memory_space<vmem>>, %arg6: memref<128x128xf32, #tpu.memory_space<vmem>>, %arg7: memref<1x128xf32, #tpu.memory_space<vmem>>, %arg8: memref<128x128xf32, #tpu.memory_space<vmem>>, %arg9: memref<1x128xf32, #tpu.memory_space<vmem>>, %arg10: memref<8x128xf32, #tpu.memory_space<vmem>>) attributes {dimension_semantics = [#tpu.dimension_semantics<parallel>], iteration_bounds = array<i64: 1>, scalar_prefetch = 0 : i64, scratch_operands = 0 : i64, tpu.core_type = #tpu.core_type<tc>, window_params = [{transform_indices = @transform_0, window_bounds = array<i64: 8, 128>}, {pipeline_mode = #tpu.pipeline_mode<synchronous>, transform_indices = @transform_1, window_bounds = array<i64: 128, 128>}, {pipeline_mode = #tpu.pipeline_mode<synchronous>, transform_indices = @transform_2, window_bounds = array<i64: 1, 128>}, {pipeline_mode = #tpu.pipeline_mode<synchronous>, transform_indices = @transform_3, window_bounds = array<i64: 128, 128>}, {pipeline_mode = #tpu.pipeline_mode<synchronous>, transform_indices = @transform_4, window_bounds = array<i64: 1, 128>}, {pipeline_mode = #tpu.pipeline_mode<synchronous>, transform_indices = @transform_5, window_bounds = array<i64: 128, 128>}, {pipeline_mode = #tpu.pipeline_mode<synchronous>, transform_indices = @transform_6, window_bounds = array<i64: 1, 128>}, {pipeline_mode = #tpu.pipeline_mode<synchronous>, transform_indices = @transform_7, window_bounds = array<i64: 128, 128>}, {pipeline_mode = #tpu.pipeline_mode<synchronous>, transform_indices = @transform_8, window_bounds = array<i64: 1, 128>}, {transform_indices = @transform_9, window_bounds = array<i64: 8, 128>}]} {
    %c0 = arith.constant 0 : index
    %c0_0 = arith.constant 0 : index
    %0 = vector.load %arg1[%c0, %c0_0] : memref<8x128xf32, #tpu.memory_space<vmem>>, vector<8x128xf32>
    %c0_1 = arith.constant 0 : index
    %c0_2 = arith.constant 0 : index
    %1 = vector.load %arg2[%c0_1, %c0_2] : memref<128x128xf32, #tpu.memory_space<vmem>>, vector<128x128xf32>
    %c0_3 = arith.constant 0 : index
    %c0_4 = arith.constant 0 : index
    %2 = vector.load %arg3[%c0_3, %c0_4] : memref<1x128xf32, #tpu.memory_space<vmem>>, vector<1x128xf32>
    %cst = arith.constant dense<0.000000e+00> : vector<8x128xf32>
    %3 = tpu.matmul %0, %1, %cst {dimension_numbers = #tpu.dot_dimension_numbers<[1], [0], [0], [1], [0, 0, 1, 1], [], []>} : vector<8x128xf32>, vector<128x128xf32>, vector<8x128xf32> -> vector<8x128xf32>
    %4 = vector.broadcast %2 : vector<1x128xf32> to vector<8x128xf32>
    %5 = arith.addf %3, %4 : vector<8x128xf32>
    %c0_5 = arith.constant 0 : index
    %c0_6 = arith.constant 0 : index
    %6 = vector.load %arg4[%c0_5, %c0_6] : memref<128x128xf32, #tpu.memory_space<vmem>>, vector<128x128xf32>
    %c0_7 = arith.constant 0 : index
    %c0_8 = arith.constant 0 : index
    %7 = vector.load %arg5[%c0_7, %c0_8] : memref<1x128xf32, #tpu.memory_space<vmem>>, vector<1x128xf32>
    %cst_9 = arith.constant dense<0.000000e+00> : vector<8x128xf32>
    %8 = tpu.matmul %5, %6, %cst_9 {dimension_numbers = #tpu.dot_dimension_numbers<[1], [0], [0], [1], [0, 0, 1, 1], [], []>} : vector<8x128xf32>, vector<128x128xf32>, vector<8x128xf32> -> vector<8x128xf32>
    %9 = vector.broadcast %7 : vector<1x128xf32> to vector<8x128xf32>
    %10 = arith.addf %8, %9 : vector<8x128xf32>
    %c0_10 = arith.constant 0 : index
    %c0_11 = arith.constant 0 : index
    %11 = vector.load %arg6[%c0_10, %c0_11] : memref<128x128xf32, #tpu.memory_space<vmem>>, vector<128x128xf32>
    %c0_12 = arith.constant 0 : index
    %c0_13 = arith.constant 0 : index
    %12 = vector.load %arg7[%c0_12, %c0_13] : memref<1x128xf32, #tpu.memory_space<vmem>>, vector<1x128xf32>
    %cst_14 = arith.constant dense<0.000000e+00> : vector<8x128xf32>
    %13 = tpu.matmul %10, %11, %cst_14 {dimension_numbers = #tpu.dot_dimension_numbers<[1], [0], [0], [1], [0, 0, 1, 1], [], []>} : vector<8x128xf32>, vector<128x128xf32>, vector<8x128xf32> -> vector<8x128xf32>
    %14 = vector.broadcast %12 : vector<1x128xf32> to vector<8x128xf32>
    %15 = arith.addf %13, %14 : vector<8x128xf32>
    %cst_15 = arith.constant 0.000000e+00 : f32
    %16 = vector.broadcast %cst_15 : f32 to vector<8x128xf32>
    %17 = arith.maximumf %15, %16 : vector<8x128xf32>
    %c0_16 = arith.constant 0 : index
    %c0_17 = arith.constant 0 : index
    %18 = vector.load %arg8[%c0_16, %c0_17] : memref<128x128xf32, #tpu.memory_space<vmem>>, vector<128x128xf32>
    %c0_18 = arith.constant 0 : index
    %c0_19 = arith.constant 0 : index
    %19 = vector.load %arg9[%c0_18, %c0_19] : memref<1x128xf32, #tpu.memory_space<vmem>>, vector<1x128xf32>
    %cst_20 = arith.constant dense<0.000000e+00> : vector<8x128xf32>
    %20 = tpu.matmul %17, %18, %cst_20 {dimension_numbers = #tpu.dot_dimension_numbers<[1], [0], [0], [1], [0, 0, 1, 1], [], []>} : vector<8x128xf32>, vector<128x128xf32>, vector<8x128xf32> -> vector<8x128xf32>
    %21 = vector.broadcast %19 : vector<1x128xf32> to vector<8x128xf32>
    %22 = arith.addf %20, %21 : vector<8x128xf32>
    %c0_21 = arith.constant 0 : index
    %c0_22 = arith.constant 0 : index
    %23 = vector.load %arg10[%c0_21, %c0_22] : memref<8x128xf32, #tpu.memory_space<vmem>>, vector<8x128xf32>
    tpu.vector_store %arg10[%c0_21, %c0_22], %22 {strides = array<i32>} : memref<8x128xf32, #tpu.memory_space<vmem>>, vector<8x128xf32>,
    return
  }
  func.func @transform_0(%arg0: i32) -> (i32, i32) {
    %c0_i32 = arith.constant 0 : i32
    %c0_i32_0 = arith.constant 0 : i32
    return %arg0, %c0_i32 : i32, i32
  }
  func.func @transform_1(%arg0: i32) -> (i32, i32) {
    %c0_i32 = arith.constant 0 : i32
    %c0_i32_0 = arith.constant 0 : i32
    %c0_i32_1 = arith.constant 0 : i32
    return %c0_i32, %c0_i32_0 : i32, i32
  }
  func.func @transform_2(%arg0: i32) -> (i32, i32) {
    %c0_i32 = arith.constant 0 : i32
    %c0_i32_0 = arith.constant 0 : i32
    %c0_i32_1 = arith.constant 0 : i32
    return %c0_i32, %c0_i32_0 : i32, i32
  }
  func.func @transform_3(%arg0: i32) -> (i32, i32) {
    %c0_i32 = arith.constant 0 : i32
    %c0_i32_0 = arith.constant 0 : i32
    %c0_i32_1 = arith.constant 0 : i32
    return %c0_i32, %c0_i32_0 : i32, i32
  }
  func.func @transform_4(%arg0: i32) -> (i32, i32) {
    %c0_i32 = arith.constant 0 : i32
    %c0_i32_0 = arith.constant 0 : i32
    %c0_i32_1 = arith.constant 0 : i32
    return %c0_i32, %c0_i32_0 : i32, i32
  }
  func.func @transform_5(%arg0: i32) -> (i32, i32) {
    %c0_i32 = arith.constant 0 : i32
    %c0_i32_0 = arith.constant 0 : i32
    %c0_i32_1 = arith.constant 0 : i32
    return %c0_i32, %c0_i32_0 : i32, i32
  }
  func.func @transform_6(%arg0: i32) -> (i32, i32) {
    %c0_i32 = arith.constant 0 : i32
    %c0_i32_0 = arith.constant 0 : i32
    %c0_i32_1 = arith.constant 0 : i32
    return %c0_i32, %c0_i32_0 : i32, i32
  }
  func.func @transform_7(%arg0: i32) -> (i32, i32) {
    %c0_i32 = arith.constant 0 : i32
    %c0_i32_0 = arith.constant 0 : i32
    %c0_i32_1 = arith.constant 0 : i32
    return %c0_i32, %c0_i32_0 : i32, i32
  }
  func.func @transform_8(%arg0: i32) -> (i32, i32) {
    %c0_i32 = arith.constant 0 : i32
    %c0_i32_0 = arith.constant 0 : i32
    %c0_i32_1 = arith.constant 0 : i32
    return %c0_i32, %c0_i32_0 : i32, i32
  }
  func.func @transform_9(%arg0: i32) -> (i32, i32) {
    %c0_i32 = arith.constant 0 : i32
    %c0_i32_0 = arith.constant 0 : i32
    return %arg0, %c0_i32 : i32, i32
  }
}

</mosaic_0001>

<bundles_post_ra>
// kernel: tpu_custom_call.1
= control target key start
LH: loop header
LB: loop body
LE: loop exit
PB: predicated region body
PF: predicated region fallthrough
CT: control target
= control target key end

     0   :  { %14 = vsyncpa [#allocation3], 0  ;;  %s1147_s0 = inlined_call_operand.hbm [shape: f32[8,128], index: 0, kind: input, shape index: {}]   ;;  %s1148_s1 = inlined_call_operand.hbm [shape: f32[128,128], index: 1, kind: input, shape index: {}]   ;;  %s1149_s2 = inlined_call_operand.vmem [shape: f32[1,128], index: 2, kind: input, shape index: {}]   ;;  %s1150_s3 = inlined_call_operand.hbm [shape: f32[128,128], index: 3, kind: input, shape index: {}]   ;;  %s1151_s4 = inlined_call_operand.vmem [shape: f32[1,128], index: 4, kind: input, shape index: {}]   ;;  %s1152_s5 = inlined_call_operand.hbm [shape: f32[128,128], index: 5, kind: input, shape index: {}]   ;;  %s1153_s6 = inlined_call_operand.vmem [shape: f32[1,128], index: 6, kind: input, shape index: {}]   ;;  %s1154_s7 = inlined_call_operand.hbm [shape: f32[128,128], index: 7, kind: input, shape index: {}]   ;;  %s1155_s8 = inlined_call_operand.vmem [shape: f32[1,128], index: 8, kind: input, shape index: {}]   ;;  %s1156_s9 = inlined_call_operand.hbm [shape: f32[8,128], index: 9, kind: output, shape index: {}]  }
   0x1   :  { %15 = vsyncpa [#allocation6], 0 }
   0x2   :  { %16 = vsyncpa [#allocation9], 0 }
   0x3   :  { %17 = vsyncpa [#allocation4], 0  ;;  %s950_s30 = smov [#allocation5]   ;;  %s810_s13 = scalar_lea.hbm %s1148_s1, 2048 }
   0x4   :  { %s33_s10 = sshll.u32 %s950_s30, 4  ;;  %p811_p0 = scmp.ne.s32.totalorder %s1148_s1, %s810_s13  ;;  %s34_s10 = int_to_ptr.vmem [resolvable:$true] %s33_s10 }
   0x5   :  { %p814_p1 = scmp.lt.u32.totalorder %s810_s13, %s1148_s1 }
   0x7   :  { %p816_p2 = pnand %p814_p1, %p811_p0 }
   0x9   :  { %819 = shalt.err (!%p816_p2)
}
   0xa   :  { %s820_s18 = scalar_lea.vmem %s34_s10, 2048  ;;  %p825_p4 = scmp.lt.s32.totalorder %s34_s10, %s34_s10 }
   0xb   :  { %p821_p3 = scmp.ne.s32.totalorder %s34_s10, %s820_s18  ;;  %p826_p5 = scmp.lt.s32.totalorder %s820_s18, %s820_s18 }
   0xd   :  { %p827_p6 = por %p826_p5, %p825_p4 }
   0xf   :  { %p828_p7 = pnand %p827_p6, %p821_p3 }
  0x11   :  { %831 = shalt.err (!%p828_p7)
}
  0x12   :  { %s951_s19 = smov 128   ;;  %s952_s20 = smov 8  }
  0x13   :  { %39 = dma.hbm_to_vmem [thread:$0]  %s1148_s1, 2048, %s34_s10, [#allocation6], %s951_s19, %s951_s19, %s952_s20  }
  0x14   :  { %s953_s23 = smov [#allocation8]   ;;  %s954_s25 = smov [#allocation2]  }
  0x15   :  { %s61_s24 = sshll.u32 %s953_s23, 4  ;;  %s24_s26 = sshll.u32 %s954_s25, 4  ;;  %s62_s24 = int_to_ptr.vmem [resolvable:$true] %s61_s24  ;;  %s25_s26 = int_to_ptr.vmem [resolvable:$true] %s24_s26 }
  0x16   :  { %s832_s29 = scalar_lea.hbm %s1152_s5, 2048 }
  0x17   :  { %p833_p8 = scmp.ne.s32.totalorder %s1152_s5, %s832_s29  ;;  %p836_p9 = scmp.lt.u32.totalorder %s832_s29, %s1152_s5 }
  0x19   :  { %p838_p10 = pnand %p836_p9, %p833_p8 }
  0x1b   :  { %841 = shalt.err (!%p838_p10)
}
  0x1c   :  { %s842_s1 = scalar_lea.vmem %s62_s24, 2048  ;;  %p847_p12 = scmp.lt.s32.totalorder %s62_s24, %s62_s24 }
  0x1d   :  { %p843_p11 = scmp.ne.s32.totalorder %s62_s24, %s842_s1  ;;  %p848_p13 = scmp.lt.s32.totalorder %s842_s1, %s842_s1 }
  0x1f   :  { %p849_p0 = por %p848_p13, %p847_p12 }
  0x21   :  { %p850_p1 = pnand %p849_p0, %p843_p11 }
  0x23   :  { %853 = shalt.err (!%p850_p1)
}
  0x24   :  { %67 = dma.hbm_to_vmem [thread:$0]  %s1152_s5, 2048, %s62_s24, [#allocation9], %s951_s19, %s951_s19, %s952_s20  }
  0x25   :  { %s854_s17 = scalar_lea.hbm %s1147_s0, 128 }
  0x26   :  { %p855_p2 = scmp.ne.s32.totalorder %s1147_s0, %s854_s17  ;;  %p858_p3 = scmp.lt.u32.totalorder %s854_s17, %s1147_s0 }
  0x28   :  { %p860_p4 = pnand %p858_p3, %p855_p2 }
  0x2a   :  { %863 = shalt.err (!%p860_p4)
}
  0x2b   :  { %s864_s25 = scalar_lea.vmem %s25_s26, 128  ;;  %p869_p6 = scmp.lt.s32.totalorder %s25_s26, %s25_s26 }
  0x2c   :  { %p865_p5 = scmp.ne.s32.totalorder %s25_s26, %s864_s25  ;;  %p870_p7 = scmp.lt.s32.totalorder %s864_s25, %s864_s25 }
  0x2e   :  { %p871_p8 = por %p870_p7, %p869_p6 }
  0x30   :  { %p872_p9 = pnand %p871_p8, %p865_p5 }
  0x32   :  { %875 = shalt.err (!%p872_p9)
}
  0x33   :  { %27 = dma.hbm_to_vmem [thread:$0]  %s1147_s0, 128, %s25_s26, [#allocation3]  }
  0x34   :  { %s955_s27 = smov [#allocation7]   ;;  %s956_s29 = smov [#allocation10]  }
  0x35   :  { %s47_s28 = sshll.u32 %s955_s27, 4  ;;  %s75_s30 = sshll.u32 %s956_s29, 4  ;;  %s48_s28 = int_to_ptr.vmem [resolvable:$true] %s47_s28  ;;  %s76_s30 = int_to_ptr.vmem [resolvable:$true] %s75_s30 }
  0x36   :  { %s876_s13 = scalar_lea.hbm %s1150_s3, 2048 }
  0x37   :  { %p877_p10 = scmp.ne.s32.totalorder %s1150_s3, %s876_s13  ;;  %p880_p11 = scmp.lt.u32.totalorder %s876_s13, %s1150_s3 }
  0x39   :  { %p882_p12 = pnand %p880_p11, %p877_p10 }
  0x3b   :  { %885 = shalt.err (!%p882_p12)
}
  0x3c   :  { %s886_s0 = scalar_lea.vmem %s48_s28, 2048  ;;  %p891_p0 = scmp.lt.s32.totalorder %s48_s28, %s48_s28 }
  0x3d   :  { %p887_p13 = scmp.ne.s32.totalorder %s48_s28, %s886_s0  ;;  %p892_p1 = scmp.lt.s32.totalorder %s886_s0, %s886_s0 }
  0x3f   :  { %p893_p2 = por %p892_p1, %p891_p0 }
  0x41   :  { %p894_p3 = pnand %p893_p2, %p887_p13 }
  0x43   :  { %897 = shalt.err (!%p894_p3)
}
  0x44   :  { %53 = dma.hbm_to_vmem [thread:$0]  %s1150_s3, 2048, %s48_s28, [#allocation6], %s951_s19, %s951_s19, %s952_s20  }
  0x45   :  { %s898_s21 = scalar_lea.hbm %s1154_s7, 2048 }
  0x46   :  { %p899_p4 = scmp.ne.s32.totalorder %s1154_s7, %s898_s21  ;;  %p902_p5 = scmp.lt.u32.totalorder %s898_s21, %s1154_s7 }
  0x48   :  { %p904_p6 = pnand %p902_p5, %p899_p4 }
  0x4a   :  { %907 = shalt.err (!%p904_p6)
}
  0x4b   :  { %s908_s24 = scalar_lea.vmem %s76_s30, 2048  ;;  %p913_p8 = scmp.lt.s32.totalorder %s76_s30, %s76_s30 }
  0x4c   :  { %p909_p7 = scmp.ne.s32.totalorder %s76_s30, %s908_s24  ;;  %p914_p9 = scmp.lt.s32.totalorder %s908_s24, %s908_s24 }
  0x4e   :  { %p915_p10 = por %p914_p9, %p913_p8 }
  0x50   :  { %p916_p11 = pnand %p915_p10, %p909_p7 }
  0x52   :  { %919 = shalt.err (!%p916_p11)
}
  0x53   :  { %81 = dma.hbm_to_vmem [thread:$0]  %s1154_s7, 2048, %s76_s30, [#allocation9], %s951_s19, %s951_s19, %s952_s20  }
  0x54   :  { %942 = dma.done.wait [#allocation3], 128  }
  0x55   :  { %943 = vsyncadd [#allocation3], 4294967168 }
  0x56   :  { %944 = dma.done.wait [#allocation6], 4096  }
  0x57   :  { %945 = vsyncadd [#allocation6], 4294963200 }
  0x58   :  { %946 = dma.done.wait [#allocation9], 4096  }
  0x59   :  { %947 = vsyncadd [#allocation9], 4294963200  ;;  %v957_v0 = vmov 0.0|0.0   ;;  %vm958_vm0 = vmmov 0   ;;  %v959_v1 = vmov 0.0   ;;  %v100_v2 = vld [vmem:[#allocation5] sm:$0xff] }
  0x5a   :  { %703 = vmatprep.subr.bf16.mxu0 %v957_v0  ;;  %595 = vmatprep.mubr.msk.f32.mxu0 %vm958_vm0, %v959_v1  ;;  %v101_v3 = vld [vmem:[#allocation5 + $0x8] sm:$0xff]  ;;  %v102_v4 = vld [vmem:[#allocation5 + $0x10] sm:$0xff]  ;;  %v103_v6 = vld [vmem:[#allocation5 + $0x18] sm:$0xff] }
  0x5b   :  { %727 = vmatprep.subr.bf16.mxu1 %v957_v0  ;;  %630 = vmatprep.mubr.msk.f32.mxu1 %vm958_vm0, %v959_v1  ;;  %v704_v5 = vpack.c.bf16 %v101_v3, %v100_v2  ;;  %v707_v7 = vpack.c.bf16 %v103_v6, %v102_v4  ;;  %v104_v8 = vld [vmem:[#allocation5 + $0x20] sm:$0xff]  ;;  %v105_v9 = vld [vmem:[#allocation5 + $0x28] sm:$0xff]  ;;  %v195_v12 = vld [vmem:[#allocation7 + $0x10] sm:$0xff] }
  0x5c   :  { %v193_v10 = vld [vmem:[#allocation7] sm:$0xff]  ;;  %v194_v11 = vld [vmem:[#allocation7 + $0x8] sm:$0xff]  ;;  %v196_v13 = vld [vmem:[#allocation7 + $0x18] sm:$0xff]  ;;  %v710_v14 = vpack.c.bf16 %v105_v9, %v104_v8 }
  0x5d   :  { %705 = vmatpush3.bf16.msra.mxu0 %v704_v5  ;;  %v728_v15 = vpack.c.bf16 %v194_v11, %v193_v10  ;;  %v106_v16 = vld [vmem:[#allocation5 + $0x30] sm:$0xff]  ;;  %v107_v17 = vld [vmem:[#allocation5 + $0x38] sm:$0xff]  ;;  %v731_v18 = vpack.c.bf16 %v196_v13, %v195_v12  ;;  %v197_v19 = vld [vmem:[#allocation7 + $0x20] sm:$0xff] }
  0x5e   :  { %706 = vmatprep.subr.bf16.mxu0 %v957_v0  ;;  %v198_v20 = vld [vmem:[#allocation7 + $0x28] sm:$0xff]  ;;  %v713_v21 = vpack.c.bf16 %v107_v17, %v106_v16  ;;  %v108_v22 = vld [vmem:[#allocation5 + $0x40] sm:$0xff]  ;;  %v199_v25 = vld [vmem:[#allocation7 + $0x30] sm:$0xff] }
  0x5f   :  { %729 = vmatpush3.bf16.msra.mxu1 %v728_v15  ;;  %v109_v23 = vld [vmem:[#allocation5 + $0x48] sm:$0xff]  ;;  %v734_v24 = vpack.c.bf16 %v198_v20, %v197_v19  ;;  %v200_v26 = vld [vmem:[#allocation7 + $0x38] sm:$0xff]  ;;  %v110_v28 = vld [vmem:[#allocation5 + $0x50] sm:$0xff] }
  0x60   :  { %730 = vmatprep.subr.bf16.mxu1 %v957_v0  ;;  %v716_v27 = vpack.c.bf16 %v109_v23, %v108_v22  ;;  %v111_v29 = vld [vmem:[#allocation5 + $0x58] sm:$0xff]  ;;  %v737_v30 = vpack.c.bf16 %v200_v26, %v199_v25  ;;  %v201_v31 = vld [vmem:[#allocation7 + $0x40] sm:$0xff]  ;;  %v202_v32 = vld [vmem:[#allocation7 + $0x48] sm:$0xff] }
  0x61   :  { %708 = vmatpush3.bf16.msra.mxu0 %v707_v7  ;;  %v719_v33 = vpack.c.bf16 %v111_v29, %v110_v28  ;;  %v112_v34 = vld [vmem:[#allocation5 + $0x60] sm:$0xff]  ;;  %v113_v35 = vld [vmem:[#allocation5 + $0x68] sm:$0xff]  ;;  %v740_v36 = vpack.c.bf16 %v202_v32, %v201_v31  ;;  %v203_v37 = vld [vmem:[#allocation7 + $0x50] sm:$0xff] }
  0x62   :  { %709 = vmatprep.subr.bf16.mxu0 %v957_v0  ;;  %v204_v38 = vld [vmem:[#allocation7 + $0x58] sm:$0xff]  ;;  %v722_v39 = vpack.c.bf16 %v113_v35, %v112_v34  ;;  %v114_v40 = vld [vmem:[#allocation5 + $0x70] sm:$0xff]  ;;  %v205_v43 = vld [vmem:[#allocation7 + $0x60] sm:$0xff] }
  0x63   :  { %732 = vmatpush3.bf16.msra.mxu1 %v731_v18  ;;  %v115_v41 = vld [vmem:[#allocation5 + $0x78] sm:$0xff]  ;;  %v743_v42 = vpack.c.bf16 %v204_v38, %v203_v37  ;;  %v206_v44 = vld [vmem:[#allocation7 + $0x68] sm:$0xff]  ;;  %v207_v48 = vld [vmem:[#allocation7 + $0x70] sm:$0xff] }
  0x64   :  { %733 = vmatprep.subr.bf16.mxu1 %v957_v0  ;;  %v725_v45 = vpack.c.bf16 %v115_v41, %v114_v40  ;;  %v746_v46 = vpack.c.bf16 %v206_v44, %v205_v43  ;;  %v99_v47 = vld [vmem:[#allocation2] sm:$0xff]  ;;  %v286_v51 = vld [vmem:[#allocation8] sm:$0xff]  ;;  %v287_v52 = vld [vmem:[#allocation8 + $0x8] sm:$0xff] }
  0x65   :  { %711 = vmatpush3.bf16.msra.mxu0 %v710_v14  ;;  %v208_v49 = vld [vmem:[#allocation7 + $0x78] sm:$0xff]  ;;  %v288_v53 = vld [vmem:[#allocation8 + $0x10] sm:$0xff]  ;;  %v752_v54 = vpack.c.bf16 %v287_v52, %v286_v51  ;;  %v290_v57 = vld [vmem:[#allocation8 + $0x20] sm:$0xff] }
  0x66   :  { %712 = vmatprep.subr.bf16.mxu0 %v957_v0  ;;  %v749_v50 = vpack.c.bf16 %v208_v49, %v207_v48  ;;  %v289_v55 = vld [vmem:[#allocation8 + $0x18] sm:$0xff]  ;;  %v291_v58 = vld [vmem:[#allocation8 + $0x28] sm:$0xff]  ;;  %v292_v60 = vld [vmem:[#allocation8 + $0x30] sm:$0xff] }
  0x67   :  { %735 = vmatpush3.bf16.msra.mxu1 %v734_v24  ;;  %v755_v56 = vpack.c.bf16 %v289_v55, %v288_v53  ;;  %v758_v59 = vpack.c.bf16 %v291_v58, %v290_v57  ;;  %v293_v61 = vld [vmem:[#allocation8 + $0x38] sm:$0xff]  ;;  %v294_v63 = vld [vmem:[#allocation8 + $0x40] sm:$0xff]  ;;  %v295_v2 = vld [vmem:[#allocation8 + $0x48] sm:$0xff] }
  0x68   :  { %736 = vmatprep.subr.bf16.mxu1 %v957_v0  ;;  %v761_v62 = vpack.c.bf16 %v293_v61, %v292_v60  ;;  %v764_v3 = vpack.c.bf16 %v295_v2, %v294_v63  ;;  %v296_v4 = vld [vmem:[#allocation8 + $0x50] sm:$0xff]  ;;  %v297_v5 = vld [vmem:[#allocation8 + $0x58] sm:$0xff]  ;;  %v298_v7 = vld [vmem:[#allocation8 + $0x60] sm:$0xff] }
  0x69   :  { %714 = vmatpush3.bf16.msra.mxu0 %v713_v21  ;;  %v767_v6 = vpack.c.bf16 %v297_v5, %v296_v4  ;;  %v299_v8 = vld [vmem:[#allocation8 + $0x68] sm:$0xff]  ;;  %v491_v10 = vld [vmem:[%s1149_s2] ss:$0 sm:$0xff]  ;;  %v300_v14 = vld [vmem:[#allocation8 + $0x70] sm:$0xff] }
  0x6a   :  { %715 = vmatprep.subr.bf16.mxu0 %v957_v0  ;;  %v770_v9 = vpack.c.bf16 %v299_v8, %v298_v7  ;;  %v301_v15 = vld [vmem:[#allocation8 + $0x78] sm:$0xff]  ;;  %v380_v17 = vld [vmem:[#allocation10] sm:$0xff]  ;;  %v381_v18 = vld [vmem:[#allocation10 + $0x8] sm:$0xff] }
  0x6b   :  { %738 = vmatpush3.bf16.msra.mxu1 %v737_v30  ;;  %v773_v16 = vpack.c.bf16 %v301_v15, %v300_v14  ;;  %v382_v19 = vld [vmem:[#allocation10 + $0x10] sm:$0xff]  ;;  %v776_v20 = vpack.c.bf16 %v381_v18, %v380_v17  ;;  %v383_v21 = vld [vmem:[#allocation10 + $0x18] sm:$0xff]  ;;  %v384_v23 = vld [vmem:[#allocation10 + $0x20] sm:$0xff] }
  0x6c   :  { %739 = vmatprep.subr.bf16.mxu1 %v957_v0  ;;  %v779_v22 = vpack.c.bf16 %v383_v21, %v382_v19  ;;  %v385_v24 = vld [vmem:[#allocation10 + $0x28] sm:$0xff]  ;;  %v387_v26 = vld [vmem:[#allocation10 + $0x38] sm:$0xff]  ;;  %v388_v28 = vld [vmem:[#allocation10 + $0x40] sm:$0xff] }
  0x6d   :  { %717 = vmatpush3.bf16.msra.mxu0 %v716_v27  ;;  %v782_v25 = vpack.c.bf16 %v385_v24, %v384_v23  ;;  %v389_v29 = vld [vmem:[#allocation10 + $0x48] sm:$0xff]  ;;  %v390_v31 = vld [vmem:[#allocation10 + $0x50] sm:$0xff]  ;;  %v391_v32 = vld [vmem:[#allocation10 + $0x58] sm:$0xff] }
  0x6e   :  { %718 = vmatprep.subr.bf16.mxu0 %v957_v0  ;;  %v788_v30 = vpack.c.bf16 %v389_v29, %v388_v28  ;;  %v392_v34 = vld [vmem:[#allocation10 + $0x60] sm:$0xff]  ;;  %v393_v35 = vld [vmem:[#allocation10 + $0x68] sm:$0xff]  ;;  %v492_v37 = vld [vmem:[%s1151_s4] ss:$0 sm:$0xff]  ;;  %s960_s4 = smov [#allocation11]  }
  0x6f   :  { %741 = vmatpush3.bf16.msra.mxu1 %v740_v36  ;;  %v794_v36 = vpack.c.bf16 %v393_v35, %v392_v34  ;;  %v394_v41 = vld [vmem:[#allocation10 + $0x70] sm:$0xff]  ;;  %v493_v44 = vld [vmem:[%s1153_s6] ss:$0 sm:$0xff]  ;;  %s480_s12 = sshll.u32 %s960_s4, 4  ;;  %s481_s12 = int_to_ptr.vmem [resolvable:$true] %s480_s12 }
  0x70   :  { %742 = vmatprep.subr.bf16.mxu1 %v957_v0  ;;  %v494_v48 = vld [vmem:[%s1155_s8] ss:$0 sm:$0xff]  ;;  %s920_s13 = scalar_lea.vmem %s481_s12, 128  ;;  %p925_p13 = scmp.lt.s32.totalorder %s481_s12, %s481_s12 }
  0x71   :  { %720 = vmatpush3.bf16.msra.mxu0 %v719_v33  ;;  %v791_v33 = vpack.c.bf16 %v391_v32, %v390_v31  ;;  %p921_p12 = scmp.ne.s32.totalorder %s481_s12, %s920_s13  ;;  %p926_p0 = scmp.lt.s32.totalorder %s920_s13, %s920_s13 }
  0x72   :  { %721 = vmatprep.subr.bf16.mxu0 %v957_v0 }
  0x73   :  { %744 = vmatpush3.bf16.msra.mxu1 %v743_v42  ;;  %v395_v42 = vld [vmem:[#allocation10 + $0x78] sm:$0xff]  ;;  %p927_p1 = por %p926_p0, %p925_p13 }
  0x74   :  { %745 = vmatprep.subr.bf16.mxu1 %v957_v0  ;;  %v797_v43 = vpack.c.bf16 %v395_v42, %v394_v41 }
  0x75   :  { %723 = vmatpush3.bf16.msra.mxu0 %v722_v39  ;;  %p928_p2 = pnand %p927_p1, %p921_p12 }
  0x76   :  { %724 = vmatprep.subr.bf16.mxu0 %v957_v0 }
  0x77   :  { %747 = vmatpush3.bf16.msra.mxu1 %v746_v46 }
  0x78   :  { %748 = vmatprep.subr.bf16.mxu1 %v957_v0 }
  0x79   :  { %726 = vmatpush3.bf16.msra.mxu0 %v725_v45 }
  0x7a   :  { %751 = vmatprep.subr.bf16.mxu0 %v957_v0 }
  0x7b   :  { %750 = vmatpush3.bf16.msra.mxu1 %v749_v50 }
  0x7c   :  { %596 = vmatmul.mubr.f32.vlgmr.msra.gmra.mrb[0].mxu0 %v99_v47  ;;  %775 = vmatprep.subr.bf16.mxu1 %v957_v0 }
  0x7d   :  { %665 = vmatprep.mubr.msk.f32.mxu0 %vm958_vm0, %v959_v1  ;;  %753 = vmatpush3.bf16.msra.mxu0 %v752_v54 }
  0x7e   :  { %754 = vmatprep.subr.bf16.mxu0 %v957_v0 }
  0x81   :  { %756 = vmatpush3.bf16.msra.mxu0 %v755_v56 }
  0x82   :  { %757 = vmatprep.subr.bf16.mxu0 %v957_v0 }
  0x85   :  { %759 = vmatpush3.bf16.msra.mxu0 %v758_v59 }
  0x86   :  { %760 = vmatprep.subr.bf16.mxu0 %v957_v0 }
  0x89   :  { %762 = vmatpush3.bf16.msra.mxu0 %v761_v62 }
  0x8a   :  { %763 = vmatprep.subr.bf16.mxu0 %v957_v0 }
  0x8d   :  { %765 = vmatpush3.bf16.msra.mxu0 %v764_v3 }
  0x8e   :  { %766 = vmatprep.subr.bf16.mxu0 %v957_v0 }
  0x91   :  { %768 = vmatpush3.bf16.msra.mxu0 %v767_v6 }
  0x92   :  { %769 = vmatprep.subr.bf16.mxu0 %v957_v0 }
  0x95   :  { %771 = vmatpush3.bf16.msra.mxu0 %v770_v9 }
  0x96   :  { %772 = vmatprep.subr.bf16.mxu0 %v957_v0 }
  0x99   :  { %774 = vmatpush3.bf16.msra.mxu0 %v773_v16 }
 0x14f   :  { %v189_v11 = vpop.f32.mrb[0].mxu0 }
 0x150   :  { %v190_v12 = vadd.f32 %v491_v10, %v189_v11  ;;  %v597_v13 = vpop.f32.mrb[1].mxu0 }
 0x152   :  { %631 = vmatmul.mubr.f32.vlgmr.msra.gmra.mrb[0].mxu1 %v190_v12 }
 0x153   :  { %700 = vmatprep.mubr.msk.f32.mxu1 %vm958_vm0, %v959_v1  ;;  %777 = vmatpush3.bf16.msra.mxu1 %v776_v20  ;;  %v386_v1 = vld [vmem:[#allocation10 + $0x30] sm:$0xff] }
 0x154   :  { %778 = vmatprep.subr.bf16.mxu1 %v957_v0  ;;  %v785_v27 = vpack.c.bf16 %v387_v26, %v386_v1 }
 0x157   :  { %780 = vmatpush3.bf16.msra.mxu1 %v779_v22 }
 0x158   :  { %781 = vmatprep.subr.bf16.mxu1 %v957_v0 }
 0x15b   :  { %783 = vmatpush3.bf16.msra.mxu1 %v782_v25 }
 0x15c   :  { %784 = vmatprep.subr.bf16.mxu1 %v957_v0 }
 0x15f   :  { %786 = vmatpush3.bf16.msra.mxu1 %v785_v27 }
 0x160   :  { %787 = vmatprep.subr.bf16.mxu1 %v957_v0 }
 0x163   :  { %789 = vmatpush3.bf16.msra.mxu1 %v788_v30 }
 0x164   :  { %790 = vmatprep.subr.bf16.mxu1 %v957_v0 }
 0x167   :  { %792 = vmatpush3.bf16.msra.mxu1 %v791_v33 }
 0x168   :  { %793 = vmatprep.subr.bf16.mxu1 %v957_v0 }
 0x16b   :  { %795 = vmatpush3.bf16.msra.mxu1 %v794_v36 }
 0x16c   :  { %796 = vmatprep.subr.bf16.mxu1 %v957_v0 }
 0x16f   :  { %798 = vmatpush3.bf16.msra.mxu1 %v797_v43 }
 0x225   :  { %v282_v38 = vpop.f32.mrb[0].mxu1 }
 0x226   :  { %v283_v39 = vadd.f32 %v492_v37, %v282_v38  ;;  %v632_v40 = vpop.f32.mrb[1].mxu1 }
 0x228   :  { %666 = vmatmul.mubr.f32.vlgmr.msra.gmra.mrb[2].mxu0 %v283_v39 }
 0x2fb   :  { %v375_v45 = vpop.f32.mrb[2].mxu0 }
 0x2fc   :  { %v376_v46 = vadd.f32 %v493_v44, %v375_v45  ;;  %v667_v47 = vpop.f32.mrb[3].mxu0 }
 0x2fe   :  { %v379_v0 = vmax.f32 %v376_v46, 0.0 }
 0x300   :  { %701 = vmatmul.mubr.f32.vlgmr.msra.gmra.mrb[2].mxu1 %v379_v0 }
 0x3d3   :  { %v469_v49 = vpop.f32.mrb[2].mxu1 }
 0x3d4   :  { %v470_v50 = vadd.f32 %v494_v48, %v469_v49  ;;  %v702_v51 = vpop.f32.mrb[3].mxu1 }
 0x3d6   :  { %473 = vst [vmem:[#allocation11] sm:$0xff] %v470_v50 }
 0x3d7   :  { %931 = shalt.err (!%p928_p2)
}
 0x3d8   :  { %s932_s10 = scalar_lea.hbm %s1156_s9, 128 }
 0x3d9   :  { %p933_p3 = scmp.ne.s32.totalorder %s1156_s9, %s932_s10  ;;  %p936_p4 = scmp.lt.u32.totalorder %s932_s10, %s1156_s9 }
 0x3db   :  { %p938_p5 = pnand %p936_p4, %p933_p3 }
 0x3dd   :  { %941 = shalt.err (!%p938_p5)
}
 0x3de   :  { %483 = dma.vmem_to_hbm [thread:$0]  %s481_s12, 128, %s1156_s9, [#allocation4]  }
 0x3df   :  { %948 = dma.done.wait [#allocation4], 128  }
 0x3e0   :  { %949 = vsyncadd [#allocation4], 4294967168 }
 0x3e1   :  { %487 = vsyncpa [#allocation3], 1 }
 0x3e2   :  { %488 = vsyncpa [#allocation6], 1 }
 0x3e3   :  { %489 = vsyncpa [#allocation9], 1 }
 0x3e4   :  { %490 = vsyncpa [#allocation4], 1 }

</bundles_post_ra>
